<compile_context>
chip_gen: v5e
topology: v5e:2x2
jax: 0.10.0
libtpu: 0.0.40
codegen_flags: <defaults>
</compile_context>

<pallas_src>
import functools

import jax
import jax.numpy as jnp
from jax.experimental import pallas as pl
from jax.experimental.pallas import tpu as pltpu


def _round_up(x, m):
    return ((x + m - 1) // m) * m


def _layernorm2d_kernel(x_ref, w_ref, b_ref, o_ref, *, eps):
    # x_ref: (C, tS) — channels on sublanes, spatial pixels on the lane axis.
    x = x_ref[...].astype(jnp.float32)                 # stats in f32 regardless of storage dtype
    mu = jnp.mean(x, axis=0, keepdims=True)            # per-pixel mean over channels
    xc = x - mu
    var = jnp.mean(xc * xc, axis=0, keepdims=True)     # per-pixel variance over channels
    y = xc * jax.lax.rsqrt(var + eps)
    o_ref[...] = (w_ref[...] * y + b_ref[...]).astype(o_ref.dtype)


def layer_norm_2d(x, weight, bias, eps=1e-6):
    """PyTorch LayerNorm2d forward: normalize over the channel dim of NCHW `x`."""
    N, C, H, W = x.shape
    HW = H * W
    itemsize = x.dtype.itemsize

    # Lane-dense spatial tile: multiple of 128, sized from a ~2 MiB block budget
    # so double-buffered in+out blocks stay well under VMEM on every generation.
    ts_budget = (2 * 1024 * 1024) // max(1, C * itemsize)
    tS = min(_round_up(HW, 128), max(128, (ts_budget // 128) * 128))
    S_pad = _round_up(HW, tS)

    x3 = x.reshape(N, C, HW)
    if S_pad != HW:
        # Padding along the spatial axis is harmless: the reduction is over C only;
        # padded columns are sliced off below.
        x3 = jnp.pad(x3, ((0, 0), (0, 0), (0, S_pad - HW)))

    w2 = weight.reshape(C, 1).astype(jnp.float32)
    b2 = bias.reshape(C, 1).astype(jnp.float32)

    grid = (N, S_pad // tS)
    out = pl.pallas_call(
        functools.partial(_layernorm2d_kernel, eps=float(eps)),
        out_shape=jax.ShapeDtypeStruct((N, C, S_pad), x.dtype),
        grid=grid,
        in_specs=[
            pl.BlockSpec((None, C, tS), lambda n, s: (n, 0, s)),  # one image, one spatial tile
            pl.BlockSpec((C, 1), lambda n, s: (0, 0)),            # gamma (broadcast over lanes)
            pl.BlockSpec((C, 1), lambda n, s: (0, 0)),            # beta
        ],
        out_specs=pl.BlockSpec((None, C, tS), lambda n, s: (n, 0, s)),
        compiler_params=pltpu.CompilerParams(
            dimension_semantics=("parallel", "parallel"),
            vmem_limit_bytes=32 * 1024 * 1024,  # explicit headroom; safe on v5e/v6e/v7x
        ),
    )(x3, w2, b2)

    if S_pad != HW:
        out = out[:, :, :HW]
    return out.reshape(N, C, H, W)


def layer_norm_2d_ref(x, weight, bias, eps=1e-6):
    """Pure-JAX reference matching the PyTorch LayerNormFunction forward."""
    mu = jnp.mean(x, axis=1, keepdims=True)
    var = jnp.mean((x - mu) ** 2, axis=1, keepdims=True)
    y = (x - mu) / jnp.sqrt(var + eps)
    C = x.shape[1]
    return weight.reshape(1, C, 1, 1) * y + bias.reshape(1, C, 1, 1)


# TODO(synk): only the forward pass is implemented; the custom autograd backward
# in LayerNormFunction is out of scope for this kernel.

if __name__ == "__main__":
    key = jax.random.PRNGKey(0)
    kx, kw, kb, kx2 = jax.random.split(key, 4)

    # Small NCHW shapes consistent with the module.
    N, C, H, W = 2, 4, 16, 16
    x = jax.random.normal(kx, (N, C, H, W), jnp.float32)
    weight = 1.0 + 0.1 * jax.random.normal(kw, (C,), jnp.float32)
    bias = 0.1 * jax.random.normal(kb, (C,), jnp.float32)

    fwd = jax.jit(layer_norm_2d)
    out = jax.block_until_ready(fwd(x, weight, bias))
    ref = layer_norm_2d_ref(x, weight, bias)
    assert out.shape == (N, C, H, W), out.shape
    assert jnp.all(jnp.isfinite(out))
    assert jnp.allclose(out, ref, atol=1e-5, rtol=1e-5), float(jnp.max(jnp.abs(out - ref)))

    # Ragged spatial size: exercises the padded-remainder (cdiv) path.
    x2 = jax.random.normal(kx2, (2, 6, 10, 13), jnp.float32)
    w2 = jnp.ones((6,), jnp.float32)
    b2 = jnp.zeros((6,), jnp.float32)
    out2 = jax.block_until_ready(jax.jit(layer_norm_2d)(x2, w2, b2))
    ref2 = layer_norm_2d_ref(x2, w2, b2)
    assert jnp.allclose(out2, ref2, atol=1e-5, rtol=1e-5)

    print("KERNEL_OK")
</pallas_src>

<mosaic_0001>
module attributes {stable_mosaic.version = 11 : i64} {
  func.func @_layernorm2d_kernel(%arg0: i32, %arg1: i32, %arg2: memref<1x4x256xf32, #tpu.memory_space<vmem>>, %arg3: memref<4x1xf32, #tpu.memory_space<vmem>>, %arg4: memref<4x1xf32, #tpu.memory_space<vmem>>, %arg5: memref<1x4x256xf32, #tpu.memory_space<vmem>>) attributes {dimension_semantics = [#tpu.dimension_semantics<parallel>, #tpu.dimension_semantics<parallel>], iteration_bounds = array<i64: 2, 1>, scalar_prefetch = 0 : i64, scratch_operands = 0 : i64, tpu.core_type = #tpu.core_type<tc>, window_params = [{transform_indices = @transform_0, window_bounds = array<i64: 1, 4, 256>}, {pipeline_mode = #tpu.pipeline_mode<synchronous>, transform_indices = @transform_1, window_bounds = array<i64: 4, 1>}, {pipeline_mode = #tpu.pipeline_mode<synchronous>, transform_indices = @transform_2, window_bounds = array<i64: 4, 1>}, {transform_indices = @transform_3, window_bounds = array<i64: 1, 4, 256>}]} {
    %c0 = arith.constant 0 : index
    %c0_0 = arith.constant 0 : index
    %c0_1 = arith.constant 0 : index
    %0 = vector.load %arg2[%c0, %c0_0, %c0_1] : memref<1x4x256xf32, #tpu.memory_space<vmem>>, vector<1x4x256xf32>
    %1 = vector.shape_cast %0 : vector<1x4x256xf32> to vector<4x256xf32>
    %cst = arith.constant dense<0.000000e+00> : vector<256xf32>
    %2 = vector.multi_reduction <add>, %1, %cst [0] : vector<4x256xf32> to vector<256xf32>
    %3 = vector.shape_cast %2 : vector<256xf32> to vector<1x256xf32>
    %cst_2 = arith.constant 4.000000e+00 : f32
    %4 = vector.broadcast %cst_2 : f32 to vector<1x256xf32>
    %5 = arith.divf %3, %4 : vector<1x256xf32>
    %6 = vector.broadcast %5 : vector<1x256xf32> to vector<4x256xf32>
    %7 = arith.subf %1, %6 : vector<4x256xf32>
    %8 = arith.mulf %7, %7 : vector<4x256xf32>
    %cst_3 = arith.constant dense<0.000000e+00> : vector<256xf32>
    %9 = vector.multi_reduction <add>, %8, %cst_3 [0] : vector<4x256xf32> to vector<256xf32>
    %10 = vector.shape_cast %9 : vector<256xf32> to vector<1x256xf32>
    %cst_4 = arith.constant 4.000000e+00 : f32
    %11 = vector.broadcast %cst_4 : f32 to vector<1x256xf32>
    %12 = arith.divf %10, %11 : vector<1x256xf32>
    %cst_5 = arith.constant 9.99999997E-7 : f32
    %13 = vector.broadcast %cst_5 : f32 to vector<1x256xf32>
    %14 = arith.addf %12, %13 : vector<1x256xf32>
    %15 = math.rsqrt %14 : vector<1x256xf32>
    %16 = vector.broadcast %15 : vector<1x256xf32> to vector<4x256xf32>
    %17 = arith.mulf %7, %16 : vector<4x256xf32>
    %c0_6 = arith.constant 0 : index
    %c0_7 = arith.constant 0 : index
    %18 = vector.load %arg3[%c0_6, %c0_7] : memref<4x1xf32, #tpu.memory_space<vmem>>, vector<4x1xf32>
    %19 = vector.broadcast %18 : vector<4x1xf32> to vector<4x256xf32>
    %20 = arith.mulf %19, %17 : vector<4x256xf32>
    %c0_8 = arith.constant 0 : index
    %c0_9 = arith.constant 0 : index
    %21 = vector.load %arg4[%c0_8, %c0_9] : memref<4x1xf32, #tpu.memory_space<vmem>>, vector<4x1xf32>
    %22 = vector.broadcast %21 : vector<4x1xf32> to vector<4x256xf32>
    %23 = arith.addf %20, %22 : vector<4x256xf32>
    %c0_10 = arith.constant 0 : index
    %c0_11 = arith.constant 0 : index
    %c0_12 = arith.constant 0 : index
    %24 = vector.load %arg5[%c0_10, %c0_11, %c0_12] : memref<1x4x256xf32, #tpu.memory_space<vmem>>, vector<1x4x256xf32>
    %25 = vector.shape_cast %24 : vector<1x4x256xf32> to vector<4x256xf32>
    %26 = vector.shape_cast %23 : vector<4x256xf32> to vector<1x4x256xf32>
    tpu.vector_store %arg5[%c0_10, %c0_11, %c0_12], %26 {strides = array<i32>} : memref<1x4x256xf32, #tpu.memory_space<vmem>>, vector<1x4x256xf32>,
    return
  }
  func.func @transform_0(%arg0: i32, %arg1: i32) -> (i32, i32, i32) {
    %c0_i32 = arith.constant 0 : i32
    %c0_i32_0 = arith.constant 0 : i32
    return %arg0, %c0_i32, %arg1 : i32, i32, i32
  }
  func.func @transform_1(%arg0: i32, %arg1: i32) -> (i32, i32) {
    %c0_i32 = arith.constant 0 : i32
    %c0_i32_0 = arith.constant 0 : i32
    %c0_i32_1 = arith.constant 0 : i32
    return %c0_i32, %c0_i32_0 : i32, i32
  }
  func.func @transform_2(%arg0: i32, %arg1: i32) -> (i32, i32) {
    %c0_i32 = arith.constant 0 : i32
    %c0_i32_0 = arith.constant 0 : i32
    %c0_i32_1 = arith.constant 0 : i32
    return %c0_i32, %c0_i32_0 : i32, i32
  }
  func.func @transform_3(%arg0: i32, %arg1: i32) -> (i32, i32, i32) {
    %c0_i32 = arith.constant 0 : i32
    %c0_i32_0 = arith.constant 0 : i32
    return %arg0, %c0_i32, %arg1 : i32, i32, i32
  }
}

</mosaic_0001>

<bundles_post_ra>
// kernel: layer_norm_2d.1
= control target key start
LH: loop header
LB: loop body
LE: loop exit
PB: predicated region body
PF: predicated region fallthrough
CT: control target
= control target key end

     0   :  { %s505_s12 = smov 0   ;;  %s507_s13 = smov 0   ;;  %s558_s0 = inlined_call_operand.vmem [shape: f32[2,4,256], index: 0, kind: input, shape index: {}]   ;;  %s559_s1 = inlined_call_operand.vmem [shape: f32[4,1], index: 1, kind: input, shape index: {}]   ;;  %s560_s2 = inlined_call_operand.vmem [shape: f32[4,1], index: 2, kind: input, shape index: {}]   ;;  %s561_s3 = inlined_call_operand.vmem [shape: f32[2,4,256], index: 3, kind: output, shape index: {}]  }
   0x1   :  { %s509_s14 = smov 0  }
   0x2 LB: > { %s25_s15 = sadd.s32 1, %s477_s13  ;;  %p417_p0 = scmp.ge.s32.totalorder %s481_s14, 1  ;;  %s481_s14 = sphi %s509_s14, %s13_s14   ;;  %s477_s13 = sphi %s507_s13, %s563_s13   ;;  %s473_s12 = sphi %s505_s12, %s562_s12  }
   0x3   : > { %p27_p1 = scmp.ge.s32.totalorder %s25_s15, 2  ;;  %p158_p2 = scmp.lt.s32.totalorder %s481_s14, 3 }
   0x5   : > { %s565_s15 = smov (%p27_p1, %s25_s15), 0  ;;  %p159_p3 = pnand %p417_p0, %p158_p2 }
   0x6   : > { %p191_p4 = scmp.lt.s32.totalorder (!%p159_p3), %s473_s12, 1 }
   0x7   : > { %162 = sbr.rel (%p159_p3) target bundleno = 143 (0x8f), region = 32 }
   0xc   : > { %v298_v0 = vld [vmem:[%s559_s1] sm:$0xf]  ;;  %v483_v1 = vmov 0   ;;  %s567_s12 = smov (!%p191_p4, %s473_s12), 1  ;;  %v484_v2 = vmov 4.0   ;;  %vm217_vm0 = vcmask 1043456  }
   0xd   : > { %452 = vset.pattern.permute.xlu0 %v483_v1  ;;  %s424_s18 = sshll.u32 %s567_s12, 3  ;;  %453 = vrcp.f32 %v484_v2  ;;  %v312_v4 = vld [vmem:[%s560_s2] sm:$0xf] }
   0xe   : > { %301 = vperm.xlu0 %452, %v298_v0   ;;  %s198_s21 = scalar_lea.vmem %s558_s0, %s424_s18  ;;  %s208_s26 = scalar_lea.vmem %s561_s3, %s424_s18 }
   0xf   : > { %v210_v3 = vld [vmem:[%s198_s21] sm:$0xff] }
  0x10   : > { %212 = vst [vmem:[#allocation1] ss:$2 sm:$0xff] %v210_v3 }
  0x13   : > { %v454_v5 = vpop.eup %453 }
  0x14   : > { %v233_v6 = vmul.f32 4.0, %v454_v5  ;;  %vm237_vm1 = vweird.f32 %v454_v5 }
  0x16   : > { %315 = vperm.xlu0 %452, %v312_v4   ;;  %v234_v7 = vsub.f32 1.0, %v233_v6 }
  0x17   : > { %v213_v8 = vld.sshfl [vmem:[#allocation1] sm:$0xff pattern:$0x75316420]  ;;  %v214_v9 = vld.sshfl [vmem:[#allocation1 + $0x8] sm:$0xff pattern:$0x75316420] }
  0x18   : > { %v218_v10 = vsel %vm217_vm0, %v213_v8, 0.0  ;;  %v225_v11 = vsel %vm217_vm0, %v214_v9, 0.0  ;;  %v235_v14 = vmul.f32 %v454_v5, %v234_v7 }
  0x19   : > { %v219_v12 = vrot.slane %v218_v10, 4  ;;  %v226_v13 = vrot.slane %v225_v11, 4 }
  0x1a   : > { %v236_v19 = vadd.f32 %v454_v5, %v235_v14 }
  0x1b   : > { %v220_v15 = vadd.f32 %v219_v12, %v218_v10  ;;  %v227_v16 = vadd.f32 %v226_v13, %v225_v11 }
  0x1c   : > { %v238_v24 = vsel %vm237_vm1, %v454_v5, %v236_v19 }
  0x1d   : > { %v221_v17 = vrot.slane %v220_v15, 2  ;;  %v228_v18 = vrot.slane %v227_v16, 2 }
  0x1f   : > { %v222_v20 = vadd.f32 %v221_v17, %v220_v15  ;;  %v229_v21 = vadd.f32 %v228_v18, %v227_v16 }
  0x21   : > { %v223_v22 = vrot.slane %v222_v20, 1  ;;  %v230_v23 = vrot.slane %v229_v21, 1 }
  0x23   : > { %v224_v25 = vadd.f32 %v223_v22, %v222_v20  ;;  %v231_v26 = vadd.f32 %v230_v23, %v229_v21 }
  0x25   : > { %v239_v27 = vmul.f32 %v238_v24, %v224_v25  ;;  %v240_v28 = vmul.f32 %v238_v24, %v231_v26 }
  0x27   : > { %v243_v29 = vrot.slane %v240_v28, 4 }
  0x29   : > { %v244_v30 = vsel %vm217_vm0, %v239_v27, %v243_v29 }
  0x2a   : > { %v246_v31 = vsub.f32 %v210_v3, %v244_v30 }
  0x2c   : > { %v247_v32 = vmul.f32 %v246_v31, %v246_v31 }
  0x2e   : > { %249 = vst [vmem:[#allocation1] ss:$2 sm:$0xff] %v247_v32 }
  0x35   : > { %v250_v33 = vld.sshfl [vmem:[#allocation1] sm:$0xff pattern:$0x75316420]  ;;  %v251_v34 = vld.sshfl [vmem:[#allocation1 + $0x8] sm:$0xff pattern:$0x75316420] }
  0x36   : > { %v254_v35 = vsel %vm217_vm0, %v250_v33, 0.0  ;;  %v261_v36 = vsel %vm217_vm0, %v251_v34, 0.0 }
  0x37   : > { %v255_v37 = vrot.slane %v254_v35, 4  ;;  %v262_v38 = vrot.slane %v261_v36, 4 }
  0x39   : > { %v256_v39 = vadd.f32 %v255_v37, %v254_v35  ;;  %v263_v40 = vadd.f32 %v262_v38, %v261_v36 }
  0x3b   : > { %v257_v41 = vrot.slane %v256_v39, 2  ;;  %v264_v42 = vrot.slane %v263_v40, 2 }
  0x3d   : > { %v258_v43 = vadd.f32 %v257_v41, %v256_v39  ;;  %v265_v44 = vadd.f32 %v264_v42, %v263_v40 }
  0x3f   : > { %v259_v45 = vrot.slane %v258_v43, 1  ;;  %v266_v46 = vrot.slane %v265_v44, 1 }
  0x41   : > { %v260_v47 = vadd.f32 %v259_v45, %v258_v43  ;;  %v267_v48 = vadd.f32 %v266_v46, %v265_v44 }
  0x43   : > { %v268_v49 = vmul.f32 %v260_v47, %v238_v24  ;;  %v269_v50 = vmul.f32 %v267_v48, %v238_v24 }
  0x45   : > { %v270_v51 = vadd.f32 1e-06, %v268_v49  ;;  %v271_v52 = vadd.f32 1e-06, %v269_v50 }
  0x47   : > { %455 = vrsqrt.f32 %v270_v51  ;;  %vm288_vm2 = vweird.f32 %v271_v52  ;;  %vm278_vm4 = vweird.f32 %v270_v51 }
  0x48   : > { %457 = vrsqrt.f32 %v271_v52 }
  0x4d   : > { %v456_v53 = vpop.eup %455 }
  0x4e   : > { %v458_v54 = vpop.eup %457  ;;  %v273_v55 = vmul.f32 %v456_v53, %v270_v51  ;;  %vm279_vm5 = vweird.f32 %v456_v53 }
  0x4f   : > { %v283_v56 = vmul.f32 %v458_v54, %v271_v52  ;;  %vm289_vm3 = vweird.f32 %v458_v54  ;;  %vm280_vm7 = vmor %vm278_vm4, %vm279_vm5 }
  0x50   : > { %v274_v57 = vmul.f32 %v456_v53, %v273_v55  ;;  %vm290_vm6 = vmor %vm288_vm2, %vm289_vm3 }
  0x51   : > { %v284_v58 = vmul.f32 %v458_v54, %v283_v56 }
  0x52   : > { %v275_v59 = vmul.f32 0.5, %v274_v57 }
  0x53   : > { %v285_v60 = vmul.f32 0.5, %v284_v58 }
  0x54   : > { %v276_v61 = vsub.f32 1.5, %v275_v59 }
  0x55   : > { %v286_v62 = vsub.f32 1.5, %v285_v60 }
  0x56   : > { %v277_v63 = vmul.f32 %v456_v53, %v276_v61 }
  0x57   : > { %v287_v0 = vmul.f32 %v458_v54, %v286_v62 }
  0x58   : > { %v281_v1 = vsel %vm280_vm7, %v456_v53, %v277_v63 }
  0x59   : > { %v291_v2 = vsel %vm290_vm6, %v458_v54, %v287_v0 }
  0x5a   : > { %v294_v3 = vrot.slane %v291_v2, 4 }
  0x5c   : > { %v295_v4 = vsel %vm217_vm0, %v281_v1, %v294_v3 }
  0x5d   : > { %v297_v5 = vmul.f32 %v295_v4, %v246_v31 }
  0x5f   : > { %305 = vst [vmem:[#allocation1] ss:$2 sm:$0xff] %v297_v5 }
  0x66   : > { %v307_v7 = vld.sshfl [vmem:[#allocation1 + $0x8] sm:$0xff pattern:$0x75316420]  ;;  %v306_v8 = vld.sshfl [vmem:[#allocation1] sm:$0xff pattern:$0x75316420] }
  0x80   : > { %v302_v6 = vpop.permute.xlu0 %301 }
  0x81   : > { %v311_v9 = vmul.f32 %v307_v7, %v302_v6  ;;  %v310_v11 = vmul.f32 %v306_v8, %v302_v6 }
  0x88   : > { %v316_v10 = vpop.permute.xlu0 %315 }
  0x89   : > { %v319_v12 = vadd.f32 %v316_v10, %v311_v9  ;;  %v318_v13 = vadd.f32 %v316_v10, %v310_v11 }
  0x8b   : > { %v322_v14 = vrot.slane %v319_v12, 4 }
  0x8d   : > { %v323_v15 = vsel %vm217_vm0, %v318_v13, %v322_v14 }
  0x8e   : > { %325 = vst [vmem:[%s208_s26] sm:$0xff] %v323_v15 }
  0x8f PF: > { %s13_s14 = sadd.s32 1, %s481_s14   ;;  %s562_s12 = smov %s477_s13 }
  0x90   : > { %p10_p5 = scmp.ge.s32.totalorder %s13_s14, 4   ;;  %s563_s13 = smov %s565_s15 }
  0x92   :  { %12 = sbr.rel (!%p10_p5) target bundleno = 2 (0x2), region = 62 }

</bundles_post_ra>
